<compile_context>
chip_gen: v5e
topology: v5e:2x2
jax: 0.10.0
libtpu: 0.0.40
codegen_flags: <defaults>
</compile_context>

<pallas_src>
import jax
import jax.numpy as jnp
from jax.experimental import pallas as pl
from jax.experimental.pallas import tpu as pltpu


def _assoc_net_kernel(x_ref, slab_ref, h0_ref, out_ref):
    """One batch tile of the full RNN rollout + final linear head, all in VMEM.

    x_ref    : (T, Bb, D)     time-major dense (one-hot) inputs for this batch tile
    slab_ref : (D+H+1, H+O)   packed parameters:
                                [0:D,   0:H]   = W_ih   (input->hidden, transposed)
                                [D:D+H, 0:H]   = W_hh   (hidden->hidden, transposed)
                                [D:D+H, H:H+O] = W_out  (hidden2tag,   transposed)
                                [D+H,   0:H]   = b      (b_ih + b_hh)
                                [D+H,   H:H+O] = b_out
    h0_ref   : (Bb, H)        initial hidden state for this batch tile
    out_ref  : (Bb, H+O)      lanes [0:H] = final hidden state, [H:H+O] = tag_space
    """
    T, Bb, D = x_ref.shape
    H = slab_ref.shape[0] - D - 1
    O = out_ref.shape[1] - H

    # Static slices into the single parameter slab (sublane offsets are
    # multiples of 8, lane offsets stay inside one 128-lane tile).
    w_ih = slab_ref[0:D, 0:H]
    w_hh = slab_ref[D:D + H, 0:H]
    w_out = slab_ref[D:D + H, H:H + O]
    b = slab_ref[D + H:D + H + 1, 0:H]
    b_out = slab_ref[D + H:D + H + 1, H:H + O]

    # --- Hoisted input projection: one MXU matmul for all T steps, bias folded once.
    # (T, Bb, D) -> (T*Bb, D) is layout-free because Bb is a full sublane tile (8).
    x_flat = x_ref[...].reshape(T * Bb, D)
    xw = jnp.dot(x_flat, w_ih, preferred_element_type=jnp.float32) + b

    # --- Serial recurrence, fully unrolled (T small and static). Each step's xw
    # slice is a contiguous sublane-tile block thanks to the time-major layout.
    h = h0_ref[...]
    for t in range(T):
        h = jnp.tanh(xw[t * Bb:(t + 1) * Bb, :]
                     + jnp.dot(h, w_hh, preferred_element_type=jnp.float32))

    # --- Output head; single lane-packed output block (one writeback DMA).
    tag = jnp.dot(h, w_out, preferred_element_type=jnp.float32) + b_out
    out_ref[:, 0:H] = h
    out_ref[:, H:H + O] = tag


def no_embed_associative_net(sentence, h0, params):
    """sentence: (B, T, D) float32 (PyTorch (batch, seq, dict) layout); h0: (B, H).
    Returns (tag_space (B, O), h_final (B, H))."""
    B, T, D = sentence.shape
    H = h0.shape[1]
    O = params["w_out"].shape[1]

    # Time-major so each recurrence step consumes a contiguous (Bb, H) tile.
    x_tm = jnp.transpose(sentence, (1, 0, 2))                     # (T, B, D)

    # Pack every parameter into one slab -> a single parameter input DMA.
    slab = jnp.zeros((D + H + 1, H + O), jnp.float32)
    slab = slab.at[0:D, 0:H].set(params["w_ih"])
    slab = slab.at[D:D + H, 0:H].set(params["w_hh"])
    slab = slab.at[D:D + H, H:H + O].set(params["w_out"])
    slab = slab.at[D + H, 0:H].set(params["b"][0])
    slab = slab.at[D + H, H:H + O].set(params["b_out"][0])

    # Batch tile: one sublane tile (8 rows) when the batch allows it; the
    # "parallel" grid axis lets v7x's two TensorCores split the batch at
    # realistic sizes (grid degenerates to (1,) here).
    bm = 8 if B % 8 == 0 else B
    grid = (B // bm,)

    out = pl.pallas_call(
        _assoc_net_kernel,
        out_shape=jax.ShapeDtypeStruct((B, H + O), jnp.float32),
        grid_spec=pltpu.PrefetchScalarGridSpec(
            num_scalar_prefetch=0,
            grid=grid,
            in_specs=[
                pl.BlockSpec((T, bm, D), lambda i: (0, i, 0)),
                pl.BlockSpec((D + H + 1, H + O), lambda i: (0, 0)),
                pl.BlockSpec((bm, H), lambda i: (i, 0)),
            ],
            out_specs=pl.BlockSpec((bm, H + O), lambda i: (i, 0)),
        ),
        compiler_params=pltpu.CompilerParams(
            dimension_semantics=("parallel",)),
    )(x_tm, slab, h0)

    h_final = out[:, :H]
    tag = out[:, H:]
    return tag, h_final


def init_params(key, dictionary_size, hidden_dim, output_size):
    """Deterministic PyTorch-style uniform(-1/sqrt(fan), 1/sqrt(fan)) init."""
    k1, k2, k3, k4, k5, k6 = jax.random.split(key, 6)
    s_rnn = 1.0 / jnp.sqrt(hidden_dim)
    s_out = 1.0 / jnp.sqrt(hidden_dim)
    return {
        # stored transposed so the kernel does x @ W
        "w_ih": jax.random.uniform(k1, (dictionary_size, hidden_dim),
                                   jnp.float32, -s_rnn, s_rnn),
        "w_hh": jax.random.uniform(k2, (hidden_dim, hidden_dim),
                                   jnp.float32, -s_rnn, s_rnn),
        "b": (jax.random.uniform(k3, (1, hidden_dim), jnp.float32, -s_rnn, s_rnn)
              + jax.random.uniform(k4, (1, hidden_dim), jnp.float32, -s_rnn, s_rnn)),
        "w_out": jax.random.uniform(k5, (hidden_dim, output_size),
                                    jnp.float32, -s_out, s_out),
        "b_out": jax.random.uniform(k6, (1, output_size),
                                    jnp.float32, -s_out, s_out),
    }


def reference_forward(sentence, h0, params):
    """Plain-JAX reference (mirrors the PyTorch loop) for correctness checking."""
    h = h0
    T = sentence.shape[1]
    for t in range(T):
        x_t = sentence[:, t]
        h = jnp.tanh(x_t @ params["w_ih"] + h @ params["w_hh"] + params["b"])
    tag = h @ params["w_out"] + params["b_out"]
    return tag, h


if __name__ == "__main__":
    # Small shapes consistent with the associative-retrieval task.
    batch = 8
    seq_len = 8
    dictionary_size = 32   # one-hot vocab size (no embedding)
    hidden_dim = 32
    output_size = 16

    key = jax.random.PRNGKey(0)
    k_x, k_p = jax.random.split(key)

    # One-hot "sentence" (batch, seq, dictionary_size), float32 like the torch path.
    tok_ids = jax.random.randint(k_x, (batch, seq_len), 0, dictionary_size)
    sentence = jax.nn.one_hot(tok_ids, dictionary_size, dtype=jnp.float32)
    h0 = jnp.zeros((batch, hidden_dim), jnp.float32)

    params = init_params(k_p, dictionary_size, hidden_dim, output_size)

    tag, h_final = no_embed_associative_net(sentence, h0, params)
    tag = jax.block_until_ready(tag)
    h_final = jax.block_until_ready(h_final)

    tag_ref, h_ref = reference_forward(sentence, h0, params)
    assert jnp.allclose(tag, tag_ref, atol=1e-5, rtol=1e-5)
    assert jnp.allclose(h_final, h_ref, atol=1e-5, rtol=1e-5)

    print("KERNEL_OK")
</pallas_src>

<mosaic_0001>
module attributes {stable_mosaic.version = 11 : i64} {
  func.func @_assoc_net_kernel(%arg0: i32, %arg1: memref<8x8x32xf32, #tpu.memory_space<vmem>>, %arg2: memref<65x48xf32, #tpu.memory_space<vmem>>, %arg3: memref<8x32xf32, #tpu.memory_space<vmem>>, %arg4: memref<8x48xf32, #tpu.memory_space<vmem>>) attributes {dimension_semantics = [#tpu.dimension_semantics<parallel>], iteration_bounds = array<i64: 1>, scalar_prefetch = 0 : i64, scratch_operands = 0 : i64, tpu.core_type = #tpu.core_type<tc>, window_params = [{transform_indices = @transform_0, window_bounds = array<i64: 8, 8, 32>}, {pipeline_mode = #tpu.pipeline_mode<synchronous>, transform_indices = @transform_1, window_bounds = array<i64: 65, 48>}, {transform_indices = @transform_2, window_bounds = array<i64: 8, 32>}, {transform_indices = @transform_3, window_bounds = array<i64: 8, 48>}]} {
    %c0 = arith.constant 0 : index
    %c0_0 = arith.constant 0 : index
    %0 = vector.load %arg2[%c0, %c0_0] : memref<65x48xf32, #tpu.memory_space<vmem>>, vector<32x32xf32>
    %c32 = arith.constant 32 : index
    %c0_1 = arith.constant 0 : index
    %1 = vector.load %arg2[%c32, %c0_1] : memref<65x48xf32, #tpu.memory_space<vmem>>, vector<32x32xf32>
    %c32_2 = arith.constant 32 : index
    %c32_3 = arith.constant 32 : index
    %2 = vector.load %arg2[%c32_2, %c32_3] : memref<65x48xf32, #tpu.memory_space<vmem>>, vector<32x16xf32>
    %c64 = arith.constant 64 : index
    %c0_4 = arith.constant 0 : index
    %3 = vector.load %arg2[%c64, %c0_4] : memref<65x48xf32, #tpu.memory_space<vmem>>, vector<1x32xf32>
    %c64_5 = arith.constant 64 : index
    %c32_6 = arith.constant 32 : index
    %4 = vector.load %arg2[%c64_5, %c32_6] : memref<65x48xf32, #tpu.memory_space<vmem>>, vector<1x16xf32>
    %c0_7 = arith.constant 0 : index
    %c0_8 = arith.constant 0 : index
    %c0_9 = arith.constant 0 : index
    %5 = vector.load %arg1[%c0_7, %c0_8, %c0_9] : memref<8x8x32xf32, #tpu.memory_space<vmem>>, vector<8x8x32xf32>
    %6 = vector.shape_cast %5 : vector<8x8x32xf32> to vector<64x32xf32>
    %cst = arith.constant dense<0.000000e+00> : vector<64x32xf32>
    %7 = tpu.matmul %6, %0, %cst {dimension_numbers = #tpu.dot_dimension_numbers<[1], [0], [0], [1], [0, 0, 1, 1], [], []>} : vector<64x32xf32>, vector<32x32xf32>, vector<64x32xf32> -> vector<64x32xf32>
    %8 = vector.broadcast %3 : vector<1x32xf32> to vector<64x32xf32>
    %9 = arith.addf %7, %8 : vector<64x32xf32>
    %c0_10 = arith.constant 0 : index
    %c0_11 = arith.constant 0 : index
    %10 = vector.load %arg3[%c0_10, %c0_11] : memref<8x32xf32, #tpu.memory_space<vmem>>, vector<8x32xf32>
    %11 = vector.extract_strided_slice %9 {offsets = [0, 0], sizes = [8, 32], strides = [1, 1]} : vector<64x32xf32> to vector<8x32xf32>
    %cst_12 = arith.constant dense<0.000000e+00> : vector<8x32xf32>
    %12 = tpu.matmul %10, %1, %cst_12 {dimension_numbers = #tpu.dot_dimension_numbers<[1], [0], [0], [1], [0, 0, 1, 1], [], []>} : vector<8x32xf32>, vector<32x32xf32>, vector<8x32xf32> -> vector<8x32xf32>
    %13 = arith.addf %11, %12 : vector<8x32xf32>
    %14 = math.tanh %13 : vector<8x32xf32>
    %15 = vector.extract_strided_slice %9 {offsets = [8, 0], sizes = [8, 32], strides = [1, 1]} : vector<64x32xf32> to vector<8x32xf32>
    %cst_13 = arith.constant dense<0.000000e+00> : vector<8x32xf32>
    %16 = tpu.matmul %14, %1, %cst_13 {dimension_numbers = #tpu.dot_dimension_numbers<[1], [0], [0], [1], [0, 0, 1, 1], [], []>} : vector<8x32xf32>, vector<32x32xf32>, vector<8x32xf32> -> vector<8x32xf32>
    %17 = arith.addf %15, %16 : vector<8x32xf32>
    %18 = math.tanh %17 : vector<8x32xf32>
    %19 = vector.extract_strided_slice %9 {offsets = [16, 0], sizes = [8, 32], strides = [1, 1]} : vector<64x32xf32> to vector<8x32xf32>
    %cst_14 = arith.constant dense<0.000000e+00> : vector<8x32xf32>
    %20 = tpu.matmul %18, %1, %cst_14 {dimension_numbers = #tpu.dot_dimension_numbers<[1], [0], [0], [1], [0, 0, 1, 1], [], []>} : vector<8x32xf32>, vector<32x32xf32>, vector<8x32xf32> -> vector<8x32xf32>
    %21 = arith.addf %19, %20 : vector<8x32xf32>
    %22 = math.tanh %21 : vector<8x32xf32>
    %23 = vector.extract_strided_slice %9 {offsets = [24, 0], sizes = [8, 32], strides = [1, 1]} : vector<64x32xf32> to vector<8x32xf32>
    %cst_15 = arith.constant dense<0.000000e+00> : vector<8x32xf32>
    %24 = tpu.matmul %22, %1, %cst_15 {dimension_numbers = #tpu.dot_dimension_numbers<[1], [0], [0], [1], [0, 0, 1, 1], [], []>} : vector<8x32xf32>, vector<32x32xf32>, vector<8x32xf32> -> vector<8x32xf32>
    %25 = arith.addf %23, %24 : vector<8x32xf32>
    %26 = math.tanh %25 : vector<8x32xf32>
    %27 = vector.extract_strided_slice %9 {offsets = [32, 0], sizes = [8, 32], strides = [1, 1]} : vector<64x32xf32> to vector<8x32xf32>
    %cst_16 = arith.constant dense<0.000000e+00> : vector<8x32xf32>
    %28 = tpu.matmul %26, %1, %cst_16 {dimension_numbers = #tpu.dot_dimension_numbers<[1], [0], [0], [1], [0, 0, 1, 1], [], []>} : vector<8x32xf32>, vector<32x32xf32>, vector<8x32xf32> -> vector<8x32xf32>
    %29 = arith.addf %27, %28 : vector<8x32xf32>
    %30 = math.tanh %29 : vector<8x32xf32>
    %31 = vector.extract_strided_slice %9 {offsets = [40, 0], sizes = [8, 32], strides = [1, 1]} : vector<64x32xf32> to vector<8x32xf32>
    %cst_17 = arith.constant dense<0.000000e+00> : vector<8x32xf32>
    %32 = tpu.matmul %30, %1, %cst_17 {dimension_numbers = #tpu.dot_dimension_numbers<[1], [0], [0], [1], [0, 0, 1, 1], [], []>} : vector<8x32xf32>, vector<32x32xf32>, vector<8x32xf32> -> vector<8x32xf32>
    %33 = arith.addf %31, %32 : vector<8x32xf32>
    %34 = math.tanh %33 : vector<8x32xf32>
    %35 = vector.extract_strided_slice %9 {offsets = [48, 0], sizes = [8, 32], strides = [1, 1]} : vector<64x32xf32> to vector<8x32xf32>
    %cst_18 = arith.constant dense<0.000000e+00> : vector<8x32xf32>
    %36 = tpu.matmul %34, %1, %cst_18 {dimension_numbers = #tpu.dot_dimension_numbers<[1], [0], [0], [1], [0, 0, 1, 1], [], []>} : vector<8x32xf32>, vector<32x32xf32>, vector<8x32xf32> -> vector<8x32xf32>
    %37 = arith.addf %35, %36 : vector<8x32xf32>
    %38 = math.tanh %37 : vector<8x32xf32>
    %39 = vector.extract_strided_slice %9 {offsets = [56, 0], sizes = [8, 32], strides = [1, 1]} : vector<64x32xf32> to vector<8x32xf32>
    %cst_19 = arith.constant dense<0.000000e+00> : vector<8x32xf32>
    %40 = tpu.matmul %38, %1, %cst_19 {dimension_numbers = #tpu.dot_dimension_numbers<[1], [0], [0], [1], [0, 0, 1, 1], [], []>} : vector<8x32xf32>, vector<32x32xf32>, vector<8x32xf32> -> vector<8x32xf32>
    %41 = arith.addf %39, %40 : vector<8x32xf32>
    %42 = math.tanh %41 : vector<8x32xf32>
    %cst_20 = arith.constant dense<0.000000e+00> : vector<8x16xf32>
    %43 = tpu.matmul %42, %2, %cst_20 {dimension_numbers = #tpu.dot_dimension_numbers<[1], [0], [0], [1], [0, 0, 1, 1], [], []>} : vector<8x32xf32>, vector<32x16xf32>, vector<8x16xf32> -> vector<8x16xf32>
    %44 = vector.broadcast %4 : vector<1x16xf32> to vector<8x16xf32>
    %45 = arith.addf %43, %44 : vector<8x16xf32>
    %c0_21 = arith.constant 0 : index
    %c0_22 = arith.constant 0 : index
    %46 = vector.load %arg4[%c0_21, %c0_22] : memref<8x48xf32, #tpu.memory_space<vmem>>, vector<8x32xf32>
    tpu.vector_store %arg4[%c0_21, %c0_22], %42 {strides = array<i32>} : memref<8x48xf32, #tpu.memory_space<vmem>>, vector<8x32xf32>,
    %c0_23 = arith.constant 0 : index
    %c32_24 = arith.constant 32 : index
    %47 = vector.load %arg4[%c0_23, %c32_24] : memref<8x48xf32, #tpu.memory_space<vmem>>, vector<8x16xf32>
    tpu.vector_store %arg4[%c0_23, %c32_24], %45 {strides = array<i32>} : memref<8x48xf32, #tpu.memory_space<vmem>>, vector<8x16xf32>,
    return
  }
  func.func @transform_0(%arg0: i32) -> (i32, i32, i32) {
    %c0_i32 = arith.constant 0 : i32
    %c0_i32_0 = arith.constant 0 : i32
    %c0_i32_1 = arith.constant 0 : i32
    return %c0_i32, %arg0, %c0_i32_0 : i32, i32, i32
  }
  func.func @transform_1(%arg0: i32) -> (i32, i32) {
    %c0_i32 = arith.constant 0 : i32
    %c0_i32_0 = arith.constant 0 : i32
    %c0_i32_1 = arith.constant 0 : i32
    return %c0_i32, %c0_i32_0 : i32, i32
  }
  func.func @transform_2(%arg0: i32) -> (i32, i32) {
    %c0_i32 = arith.constant 0 : i32
    %c0_i32_0 = arith.constant 0 : i32
    return %arg0, %c0_i32 : i32, i32
  }
  func.func @transform_3(%arg0: i32) -> (i32, i32) {
    %c0_i32 = arith.constant 0 : i32
    %c0_i32_0 = arith.constant 0 : i32
    return %arg0, %c0_i32 : i32, i32
  }
}

</mosaic_0001>

<bundles_post_ra>
// kernel: tpu_custom_call.1
= control target key start
LH: loop header
LB: loop body
LE: loop exit
PB: predicated region body
PF: predicated region fallthrough
CT: control target
= control target key end

     0   :  { %s600_s0 = inlined_call_operand.vmem [shape: f32[8,8,32], index: 0, kind: input, shape index: {}]   ;;  %s601_s1 = inlined_call_operand.vmem [shape: f32[65,48], index: 1, kind: input, shape index: {}]   ;;  %s602_s2 = inlined_call_operand.vmem [shape: f32[8,32], index: 2, kind: input, shape index: {}]   ;;  %s603_s3 = inlined_call_operand.hbm [shape: f32[8,48], index: 3, kind: output, shape index: {}]  }
   0x1   :  { %v18_v0 = vld [vmem:[%s601_s1 + $0x18] sm:$0xff]  ;;  %v17_v1 = vld [vmem:[%s601_s1 + $0x10] sm:$0xff]  ;;  %v16_v3 = vld [vmem:[%s601_s1 + $0x8] sm:$0xff] }
   0x2   :  { %383 = vmatpush.msra.mxu1 %v18_v0  ;;  %70 = vmatpush.msra.mxu0 %v18_v0  ;;  %v479_v2 = vld [vmem:[%s601_s1 + $0x38] sm:$0xff]  ;;  %v488_v4 = vld [vmem:[%s601_s1 + $0x30] sm:$0xff]  ;;  %v15_v5 = vld [vmem:[%s601_s1] sm:$0xff] }
   0x3   :  { %384 = vmatpush.msra.mxu2 %v18_v0  ;;  %165 = vmatpush.msra.mxu3 %v479_v2 }
   0x4   :  { %385 = vmatpush.msra.mxu1 %v17_v1  ;;  %71 = vmatpush.msra.mxu0 %v17_v1 }
   0x5   :  { %386 = vmatpush.msra.mxu2 %v17_v1  ;;  %166 = vmatpush.msra.mxu3 %v488_v4 }
   0x6   :  { %8 = vsyncpa [#allocation3], 0  ;;  %387 = vmatpush.msra.mxu1 %v16_v3  ;;  %v29_v6 = vld [vmem:[%s600_s0 + $0x28] sm:$0xff]  ;;  %vm33_vm0 = vcmask 261120   ;;  %72 = vmatpush.msra.mxu0 %v16_v3  ;;  %v24_v8 = vld [vmem:[%s600_s0] sm:$0xff]  ;;  %v394_v50 = vpack.i.bf16 %v488_v4, %v479_v2  ;;  %s448_s19 = smov 32  }
   0x7   :  { %v500_v7 = vld [vmem:[%s601_s1 + $0x28] sm:$0xff]  ;;  %388 = vmatpush.msra.mxu2 %v16_v3  ;;  %v512_v9 = vld [vmem:[%s601_s1 + $0x20] sm:$0xff]  ;;  %v30_v11 = vld [vmem:[%s600_s0 + $0x30] sm:$0xff]  ;;  %s449_s20 = smov [#allocation2]   ;;  %s357_s24 = sshll.u32 %s603_s3, 4  ;;  %vm348_vm1 = vcmask 392448   ;;  %s358_s24 = int_to_ptr.hbm [resolvable:$true] %s357_s24 }
   0x8   :  { %167 = vmatpush.msra.mxu3 %v500_v7  ;;  %389 = vmatpush.msra.mxu1 %v15_v5  ;;  %v99_v10 = vld [vmem:[%s602_s2] sm:$0xff]  ;;  %v31_v12 = vld [vmem:[%s600_s0 + $0x38] sm:$0xff]  ;;  %v25_v13 = vld [vmem:[%s600_s0 + $0x8] sm:$0xff]  ;;  %v399_v51 = vpack.i.bf16 %v512_v9, %v500_v7  ;;  %s355_s21 = sshll.u32 %s449_s20, 4  ;;  %s356_s21 = int_to_ptr.vmem [resolvable:$true] %s355_s21 }
   0x9   :  { %73 = vmatpush.msra.mxu0 %v15_v5  ;;  %371 = vmatmul.msk.f32.vlgmr.msra.gmra.mxu1 %vm33_vm0, %v29_v6  ;;  %v557_v16 = vld [vmem:[%s601_s1 + $0x40] ss:$0 sm:$0xff]  ;;  %v26_v21 = vld [vmem:[%s600_s0 + $0x10] sm:$0xff]  ;;  %v27_v29 = vld [vmem:[%s600_s0 + $0x18] sm:$0xff] }
   0xa   :  { %366 = vmatmul.msk.f32.vlgmr.msra.gmra.mxu0 %vm33_vm0, %v24_v8  ;;  %115 = vmatpush.msrb.mxu1 %v479_v2  ;;  %v28_v35 = vld [vmem:[%s600_s0 + $0x20] sm:$0xff]  ;;  %s447_s0 = smov 96  }
   0xb   :  { %390 = vmatpush.msra.mxu2 %v15_v5  ;;  %168 = vmatpush.msra.mxu3 %v512_v9 }
   0xc   :  { %116 = vmatpush.msrb.mxu1 %v488_v4  ;;  %372 = vmatmul.msk.f32.vlgmr.msra.gmra.mxu2 %vm33_vm0, %v30_v11 }
   0xd   :  { %140 = vmatpush.msrb.mxu2 %v479_v2  ;;  %240 = vmatpush.msrb.mxu3 %v479_v2 }
   0xe   :  { %117 = vmatpush.msrb.mxu1 %v500_v7  ;;  %317 = vrot.lane.b32.xlu1 %v557_v16, %s447_s0 }
   0xf   :  { %141 = vmatpush.msrb.mxu2 %v488_v4  ;;  %241 = vmatpush.msrb.mxu3 %v488_v4 }
  0x10   :  { %118 = vmatpush.msrb.mxu1 %v512_v9  ;;  %395 = vrot.lane.b32.xlu0 %v394_v50, %s447_s0 }
  0x11   :  { %142 = vmatpush.msrb.mxu2 %v500_v7  ;;  %242 = vmatpush.msrb.mxu3 %v500_v7 }
  0x12   :  { %374 = vmatmul.msk.f32.vlgmr.msrb.gmra.mxu1 %vm33_vm0, %v99_v10  ;;  %367 = vmatmul.msk.f32.gmra.mxu0 %vm33_vm0, %v25_v13 }
  0x13   :  { %143 = vmatpush.msrb.mxu2 %v512_v9  ;;  %190 = vmatpush.msra.mxu1 %v479_v2 }
  0x14   :  { %243 = vmatpush.msrb.mxu3 %v512_v9  ;;  %373 = vmatmul.msk.f32.gmra.mxu2 %vm33_vm0, %v31_v12 }
  0x15   :  { %191 = vmatpush.msra.mxu1 %v488_v4  ;;  %215 = vmatpush.msra.mxu2 %v479_v2 }
  0x17   :  { %192 = vmatpush.msra.mxu1 %v500_v7  ;;  %216 = vmatpush.msra.mxu2 %v488_v4 }
  0x18   :  { %400 = vrot.lane.b32.xlu0 %v399_v51, %s447_s0 }
  0x19   :  { %193 = vmatpush.msra.mxu1 %v512_v9  ;;  %217 = vmatpush.msra.mxu2 %v500_v7 }
  0x1a   :  { %368 = vmatmul.msk.f32.gmra.mxu0 %vm33_vm0, %v26_v21 }
  0x1b   :  { %265 = vmatpush.msrb.mxu1 %v479_v2  ;;  %218 = vmatpush.msra.mxu2 %v512_v9 }
  0x1d   :  { %266 = vmatpush.msrb.mxu1 %v488_v4 }
  0x1f   :  { %267 = vmatpush.msrb.mxu1 %v500_v7 }
  0x21   :  { %268 = vmatpush.msrb.mxu1 %v512_v9 }
  0x22   :  { %369 = vmatmul.msk.f32.gmra.mxu0 %vm33_vm0, %v27_v29 }
  0x2a   :  { %370 = vmatmul.msk.f32.gmra.mxu0 %vm33_vm0, %v28_v35 }
  0x82   :  { %v396_v56 = vpop.permute.xlu0 %395 }
  0x83   :  { %v398_v57 = vunpack.i.h.bf16 %v396_v56  ;;  %v397_v58 = vunpack.i.l.bf16 %v396_v56 }
  0x86   :  { %v90_v14 = vpop.f32.mrf.mxu1 }
  0x87   :  { %v75_v15 = vpop.f32.mrf.mxu0  ;;  %v91_v46 = vadd.f32 %v557_v16, %v90_v14 }
  0x88   :  { %v76_v17 = vadd.f32 %v557_v16, %v75_v15 }
  0x8a   :  { %v401_v59 = vpop.permute.xlu0 %400 }
  0x8b   :  { %v402_v60 = vunpack.i.l.bf16 %v401_v59  ;;  %v403_v61 = vunpack.i.h.bf16 %v401_v59 }
  0x8f   :  { %v120_v18 = vpop.f32.mrf.mxu1  ;;  %v93_v22 = vpop.f32.mrf.mxu2 }
  0x90   :  { %v123_v19 = vadd.f32 %v120_v18, %v76_v17  ;;  %v78_v24 = vpop.f32.mrf.mxu0  ;;  %v94_v52 = vadd.f32 %v557_v16, %v93_v22 }
  0x91   :  { %v79_v25 = vadd.f32 %v557_v16, %v78_v24 }
  0x92   :  { %405 = vtanh.f32 %v123_v19 }
  0x97   :  { %v96_v23 = vpop.f32.mrf.mxu2 }
  0x98   :  { %v406_v20 = vpop.eup %405  ;;  %v81_v30 = vpop.f32.mrf.mxu0  ;;  %v97_v62 = vadd.f32 %v557_v16, %v96_v23 }
  0x99   :  { %375 = vmatmul.msk.f32.vlgmr.msrb.gmra.mxu2 %vm33_vm0, %v406_v20  ;;  %v82_v31 = vadd.f32 %v557_v16, %v81_v30 }
  0x9a   :  { %290 = vmatpush.msrb.mxu2 %v479_v2  ;;  %v318_v2 = vpop.permute.xlu1 %317 }
  0x9c   :  { %291 = vmatpush.msrb.mxu2 %v488_v4 }
  0x9e   :  { %292 = vmatpush.msrb.mxu2 %v500_v7 }
  0xa0   :  { %293 = vmatpush.msrb.mxu2 %v512_v9  ;;  %v84_v36 = vpop.f32.mrf.mxu0 }
  0xa1   :  { %v85_v37 = vadd.f32 %v557_v16, %v84_v36 }
  0xa8   :  { %v87_v41 = vpop.f32.mrf.mxu0 }
  0xa9   :  { %v88_v42 = vadd.f32 %v557_v16, %v87_v41 }
 0x11c   :  { %v145_v26 = vpop.f32.mrf.mxu2 }
 0x11d   :  { %v148_v27 = vadd.f32 %v145_v26, %v79_v25 }
 0x11f   :  { %407 = vtanh.f32 %v148_v27 }
 0x125   :  { %v408_v28 = vpop.eup %407 }
 0x126   :  { %376 = vmatmul.msk.f32.vlgmr.msra.gmra.mxu3 %vm33_vm0, %v408_v28 }
 0x127   :  { %335 = vmatpush.msra.mxu3 %v397_v58 }
 0x129   :  { %336 = vmatpush.msra.mxu3 %v398_v57 }
 0x12b   :  { %337 = vmatpush.msra.mxu3 %v402_v60 }
 0x12d   :  { %338 = vmatpush.msra.mxu3 %v403_v61 }
 0x1a9   :  { %v170_v32 = vpop.f32.mrf.mxu3 }
 0x1aa   :  { %v173_v33 = vadd.f32 %v170_v32, %v82_v31 }
 0x1ac   :  { %409 = vtanh.f32 %v173_v33 }
 0x1b2   :  { %v410_v34 = vpop.eup %409 }
 0x1b3   :  { %377 = vmatmul.msk.f32.vlgmr.msra.gmra.mxu1 %vm33_vm0, %v410_v34 }
 0x230   :  { %v195_v38 = vpop.f32.mrf.mxu1 }
 0x231   :  { %v198_v39 = vadd.f32 %v195_v38, %v85_v37 }
 0x233   :  { %411 = vtanh.f32 %v198_v39 }
 0x239   :  { %v412_v40 = vpop.eup %411 }
 0x23a   :  { %378 = vmatmul.msk.f32.vlgmr.msra.gmra.mxu2 %vm33_vm0, %v412_v40 }
 0x2bd   :  { %v220_v43 = vpop.f32.mrf.mxu2 }
 0x2be   :  { %v223_v44 = vadd.f32 %v220_v43, %v88_v42 }
 0x2c0   :  { %413 = vtanh.f32 %v223_v44 }
 0x2c6   :  { %v414_v45 = vpop.eup %413 }
 0x2c7   :  { %379 = vmatmul.msk.f32.vlgmr.msrb.gmra.mxu3 %vm33_vm0, %v414_v45 }
 0x34a   :  { %v245_v47 = vpop.f32.mrf.mxu3 }
 0x34b   :  { %v248_v48 = vadd.f32 %v245_v47, %v91_v46 }
 0x34d   :  { %415 = vtanh.f32 %v248_v48 }
 0x353   :  { %v416_v49 = vpop.eup %415 }
 0x354   :  { %380 = vmatmul.msk.f32.vlgmr.msrb.gmra.mxu1 %vm33_vm0, %v416_v49 }
 0x3d1   :  { %v270_v53 = vpop.f32.mrf.mxu1 }
 0x3d2   :  { %v273_v54 = vadd.f32 %v270_v53, %v94_v52 }
 0x3d4   :  { %417 = vtanh.f32 %v273_v54 }
 0x3da   :  { %v418_v55 = vpop.eup %417 }
 0x3db   :  { %381 = vmatmul.msk.f32.vlgmr.msrb.gmra.mxu2 %vm33_vm0, %v418_v55 }
 0x45e   :  { %v295_v63 = vpop.f32.mrf.mxu2 }
 0x45f   :  { %v298_v0 = vadd.f32 %v295_v63, %v97_v62 }
 0x461   :  { %419 = vtanh.f32 %v298_v0 }
 0x467   :  { %v420_v1 = vpop.eup %419 }
 0x468   :  { %343 = vst.msk [vmem:[#allocation2] sm:$0xff] %vm33_vm0, %v420_v1  ;;  %382 = vmatmul.msk.f32.vlgmr.msra.gmra.mxu3 %vm33_vm0, %v420_v1 }
 0x4eb   :  { %v340_v3 = vpop.f32.mrf.mxu3 }
 0x4ec   :  { %v341_v4 = vadd.f32 %v340_v3, %v318_v2 }
 0x4ee   :  { %345 = vrot.lane.b32.xlu1 %v341_v4, %s448_s19 }
 0x560   :  { %v346_v5 = vpop.permute.xlu1 %345 }
 0x561   :  { %349 = vst.msk [vmem:[#allocation2] sm:$0xff] %vm348_vm1, %v346_v5 }
 0x562   :  { %360 = dma.vmem_to_hbm [thread:$0]  %s356_s21, 128, %s358_s24, [#allocation3]  }
 0x563   :  { %445 = dma.done.wait [#allocation3], 128  }
 0x564   :  { %446 = vsyncadd [#allocation3], 4294967168 }
 0x565   :  { %365 = vsyncpa [#allocation3], 1 }

</bundles_post_ra>
